<compile_context>
chip_gen: v6e
topology: v6e:2x2x1
jax: 0.10.0
libtpu: 0.0.40
codegen_flags: <defaults>
</compile_context>

<pallas_src>
import functools

import jax
import jax.numpy as jnp
from jax.experimental import pallas as pl
from jax.experimental.pallas import tpu as pltpu

HIDDEN = 25    # fixed by the PyTorch module
LANE = 128     # TPU lane width
SUBLANE = 8    # TPU sublane width (f32)


def _round_up(n, m):
    return ((n + m - 1) // m) * m


def _pad_axis(a, target, axis):
    if a.shape[axis] >= target:
        return a
    widths = [(0, 0)] * a.ndim
    widths[axis] = (0, target - a.shape[axis])
    return jnp.pad(a, widths)


def _vmem_bytes(tb, D, A, h_pad, a_pad, x_isz, w_isz):
    """Rough per-step VMEM footprint: double-buffered x/out tiles, f32 hidden
    intermediate, and double-buffered resident weights/biases."""
    x_buf = 2 * tb * D * x_isz
    o_buf = 2 * tb * A * 4
    h_tmp = tb * h_pad * 4
    resident = 2 * (D * h_pad * w_isz + h_pad * a_pad * w_isz
                    + h_pad * 4 + _round_up(A, LANE) * 4)
    return x_buf + o_buf + h_tmp + resident


def _auto_tile_b(D, A, h_pad, a_pad, x_isz, w_isz):
    # Target ~2 MiB of x per grid step: large per-step DMAs reach the HBM roofline
    # and amortize the ~0.35 us per-step pipeline overhead.
    tb = _round_up(max((2 << 20) // max(D * x_isz, 1), 256), SUBLANE)
    tb = min(tb, 8192)
    # Keep the working set inside a generation-safe budget
    # (v7x: 64 MiB physical / 32 MiB scoped-default VMEM per TensorCore).
    budget = 24 << 20
    while tb > 256 and _vmem_bytes(tb, D, A, h_pad, a_pad, x_isz, w_isz) > budget:
        tb = _round_up(tb // 2, SUBLANE)
    return tb


def mlp_kernel(x_ref, w1_ref, b1_ref, w2_ref, b2_ref, o_ref):
    a = o_ref.shape[-1]                       # true number_of_action (unpadded)
    # fullconnection1 + ReLU. x is cast in-register to the weight dtype (bf16 in
    # the production path) so the MXU runs at full rate; accumulation stays f32.
    x = x_ref[...].astype(w1_ref.dtype)
    h = jnp.dot(x, w1_ref[...], preferred_element_type=jnp.float32)
    h = jnp.maximum(h + b1_ref[...], 0.0)     # (tb, 128) f32 bias + ReLU
    # fullconnection2: 128-lane in-register result, lane-masked store of A columns.
    q = jnp.dot(h.astype(w2_ref.dtype), w2_ref[...],
                preferred_element_type=jnp.float32)
    o_ref[...] = (q[:, :a] + b2_ref[...]).astype(o_ref.dtype)


def prepare_params(w1t, b1, w2t, b2, *, use_bf16=True):
    """One-time parameter prep, outside the per-call jitted path.

    Pads hidden (25 -> 128) and W2's output dim to the lane width (zero padding is
    inert through matmul + ReLU) and optionally casts weights to bf16. Biases stay
    f32; b2 stays UNPADDED at (1, A) so the kernel writes only A output lanes.
    """
    h_pad = _round_up(HIDDEN, LANE)
    a_pad = _round_up(w2t.shape[1], LANE)
    wdt = jnp.bfloat16 if use_bf16 else jnp.float32
    w1t_p = _pad_axis(w1t, h_pad, axis=1).astype(wdt)                        # (D, 128)
    b1_p = _pad_axis(b1.reshape(1, -1), h_pad, axis=1).astype(jnp.float32)   # (1, 128)
    w2t_p = _pad_axis(_pad_axis(w2t, h_pad, 0), a_pad, 1).astype(wdt)        # (128, 128)
    b2_p = b2.reshape(1, -1).astype(jnp.float32)                             # (1, A)
    return w1t_p, b1_p, w2t_p, b2_p


@functools.partial(jax.jit, static_argnames=("tile_b",))
def neural_network_forward(x, params, *, tile_b=None):
    """x: (B, D); params = prepare_params(...). Returns (B, A) float32 Q-values."""
    w1t_p, b1_p, w2t_p, b2_p = params
    B, D = x.shape
    h_pad = w1t_p.shape[1]
    a_pad = w2t_p.shape[1]
    A = b2_p.shape[1]

    # Batch rounded up only to the sublane width (no copy when B % 8 == 0).
    b_pad = _round_up(B, SUBLANE)
    x_p = _pad_axis(x, b_pad, axis=0)

    x_isz = x.dtype.itemsize
    w_isz = w1t_p.dtype.itemsize
    if tile_b is None:
        tb = _auto_tile_b(D, A, h_pad, a_pad, x_isz, w_isz)
    else:
        tb = _round_up(max(int(tile_b), SUBLANE), SUBLANE)
    tb = min(tb, b_pad)
    # Use >= 2 grid blocks when the batch allows, so v7x's second TC gets work.
    if b_pad >= 2 * SUBLANE and b_pad <= tb:
        tb = _round_up(-(-b_pad // 2), SUBLANE)
    grid = (pl.cdiv(b_pad, tb),)

    vmem_limit = int(min(max(_vmem_bytes(tb, D, A, h_pad, a_pad, x_isz, w_isz)
                             + (8 << 20), 32 << 20), 48 << 20))

    out = pl.pallas_call(
        mlp_kernel,
        out_shape=jax.ShapeDtypeStruct((b_pad, A), jnp.float32),
        grid=grid,
        in_specs=[
            pl.BlockSpec((tb, D), lambda i: (i, 0)),         # x: pipelined over batch
            pl.BlockSpec((D, h_pad), lambda i: (0, 0)),      # W1t: resident
            pl.BlockSpec((1, h_pad), lambda i: (0, 0)),      # b1:  resident
            pl.BlockSpec((h_pad, a_pad), lambda i: (0, 0)),  # W2t: resident
            pl.BlockSpec((1, A), lambda i: (0, 0)),          # b2:  resident, unpadded
        ],
        out_specs=pl.BlockSpec((tb, A), lambda i: (i, 0)),   # unpadded output store
        compiler_params=pltpu.CompilerParams(
            dimension_semantics=("parallel",),               # megacore on v7x
            vmem_limit_bytes=vmem_limit,
        ),
    )(x_p, w1t_p, b1_p, w2t_p, b2_p)

    return out[:B]


def init_params(key, input_size, number_of_action):
    """Deterministic init mimicking nn.Linear default (uniform +-1/sqrt(fan_in))."""
    k1, k2, k3, k4 = jax.random.split(key, 4)
    bound1 = 1.0 / jnp.sqrt(jnp.float32(input_size))
    bound2 = 1.0 / jnp.sqrt(jnp.float32(HIDDEN))
    # Stored already transposed relative to PyTorch's (out, in) convention.
    w1t = jax.random.uniform(k1, (input_size, HIDDEN), jnp.float32, -bound1, bound1)
    b1 = jax.random.uniform(k2, (1, HIDDEN), jnp.float32, -bound1, bound1)
    w2t = jax.random.uniform(k3, (HIDDEN, number_of_action), jnp.float32, -bound2, bound2)
    b2 = jax.random.uniform(k4, (1, number_of_action), jnp.float32, -bound2, bound2)
    return w1t, b1, w2t, b2


def reference_forward(x, w1t, b1, w2t, b2):
    h = jnp.maximum(x @ w1t + b1, 0.0)
    return h @ w2t + b2


if __name__ == "__main__":
    batch = 2
    input_size = 16
    number_of_action = 4

    key = jax.random.PRNGKey(0)
    kx, kp = jax.random.split(key)
    x = jax.random.normal(kx, (batch, input_size), jnp.float32)
    w1t, b1, w2t, b2 = init_params(kp, input_size, number_of_action)
    q_ref = reference_forward(x, w1t, b1, w2t, b2)

    # --- f32 parity path (tight tolerance against the pure-JAX reference) ---
    params_f32 = prepare_params(w1t, b1, w2t, b2, use_bf16=False)
    q = jax.block_until_ready(neural_network_forward(x, params_f32))
    assert q.shape == (batch, number_of_action)
    assert jnp.allclose(q, q_ref, atol=1e-5, rtol=1e-5)

    # --- production bf16 path (weights bf16, x passed in bf16; relaxed tolerance) ---
    params_bf16 = prepare_params(w1t, b1, w2t, b2, use_bf16=True)
    q_bf = jax.block_until_ready(
        neural_network_forward(x.astype(jnp.bfloat16), params_bf16))
    assert q_bf.shape == (batch, number_of_action)
    assert jnp.allclose(q_bf.astype(jnp.float32), q_ref, atol=5e-2, rtol=5e-2)

    print("KERNEL_OK")
</pallas_src>

<mosaic_0001>
module attributes {stable_mosaic.version = 11 : i64} {
  func.func @mlp_kernel(%arg0: i32, %arg1: memref<8x16xf32, #tpu.memory_space<vmem>>, %arg2: memref<16x128xf32, #tpu.memory_space<vmem>>, %arg3: memref<1x128xf32, #tpu.memory_space<vmem>>, %arg4: memref<128x128xf32, #tpu.memory_space<vmem>>, %arg5: memref<1x4xf32, #tpu.memory_space<vmem>>, %arg6: memref<8x4xf32, #tpu.memory_space<vmem>>) attributes {dimension_semantics = [#tpu.dimension_semantics<parallel>], iteration_bounds = array<i64: 1>, scalar_prefetch = 0 : i64, scratch_operands = 0 : i64, tpu.core_type = #tpu.core_type<tc>, window_params = [{transform_indices = @transform_0, window_bounds = array<i64: 8, 16>}, {pipeline_mode = #tpu.pipeline_mode<synchronous>, transform_indices = @transform_1, window_bounds = array<i64: 16, 128>}, {pipeline_mode = #tpu.pipeline_mode<synchronous>, transform_indices = @transform_2, window_bounds = array<i64: 1, 128>}, {pipeline_mode = #tpu.pipeline_mode<synchronous>, transform_indices = @transform_3, window_bounds = array<i64: 128, 128>}, {pipeline_mode = #tpu.pipeline_mode<synchronous>, transform_indices = @transform_4, window_bounds = array<i64: 1, 4>}, {transform_indices = @transform_5, window_bounds = array<i64: 8, 4>}]} {
    %c0 = arith.constant 0 : index
    %c0_0 = arith.constant 0 : index
    %0 = vector.load %arg1[%c0, %c0_0] : memref<8x16xf32, #tpu.memory_space<vmem>>, vector<8x16xf32>
    %c0_1 = arith.constant 0 : index
    %c0_2 = arith.constant 0 : index
    %1 = vector.load %arg2[%c0_1, %c0_2] : memref<16x128xf32, #tpu.memory_space<vmem>>, vector<16x128xf32>
    %cst = arith.constant dense<0.000000e+00> : vector<8x128xf32>
    %2 = tpu.matmul %0, %1, %cst {dimension_numbers = #tpu.dot_dimension_numbers<[1], [0], [0], [1], [0, 0, 1, 1], [], []>} : vector<8x16xf32>, vector<16x128xf32>, vector<8x128xf32> -> vector<8x128xf32>
    %c0_3 = arith.constant 0 : index
    %c0_4 = arith.constant 0 : index
    %3 = vector.load %arg3[%c0_3, %c0_4] : memref<1x128xf32, #tpu.memory_space<vmem>>, vector<1x128xf32>
    %4 = vector.broadcast %3 : vector<1x128xf32> to vector<8x128xf32>
    %5 = arith.addf %2, %4 : vector<8x128xf32>
    %cst_5 = arith.constant 0.000000e+00 : f32
    %6 = vector.broadcast %cst_5 : f32 to vector<8x128xf32>
    %7 = arith.maximumf %5, %6 : vector<8x128xf32>
    %c0_6 = arith.constant 0 : index
    %c0_7 = arith.constant 0 : index
    %8 = vector.load %arg4[%c0_6, %c0_7] : memref<128x128xf32, #tpu.memory_space<vmem>>, vector<128x128xf32>
    %cst_8 = arith.constant dense<0.000000e+00> : vector<8x128xf32>
    %9 = tpu.matmul %7, %8, %cst_8 {dimension_numbers = #tpu.dot_dimension_numbers<[1], [0], [0], [1], [0, 0, 1, 1], [], []>} : vector<8x128xf32>, vector<128x128xf32>, vector<8x128xf32> -> vector<8x128xf32>
    %10 = vector.extract_strided_slice %9 {offsets = [0, 0], sizes = [8, 4], strides = [1, 1]} : vector<8x128xf32> to vector<8x4xf32>
    %c0_9 = arith.constant 0 : index
    %c0_10 = arith.constant 0 : index
    %11 = vector.load %arg5[%c0_9, %c0_10] : memref<1x4xf32, #tpu.memory_space<vmem>>, vector<1x4xf32>
    %12 = vector.broadcast %11 : vector<1x4xf32> to vector<8x4xf32>
    %13 = arith.addf %10, %12 : vector<8x4xf32>
    %c0_11 = arith.constant 0 : index
    %c0_12 = arith.constant 0 : index
    %14 = vector.load %arg6[%c0_11, %c0_12] : memref<8x4xf32, #tpu.memory_space<vmem>>, vector<8x4xf32>
    tpu.vector_store %arg6[%c0_11, %c0_12], %13 {strides = array<i32>} : memref<8x4xf32, #tpu.memory_space<vmem>>, vector<8x4xf32>,
    return
  }
  func.func @transform_0(%arg0: i32) -> (i32, i32) {
    %c0_i32 = arith.constant 0 : i32
    %c0_i32_0 = arith.constant 0 : i32
    return %arg0, %c0_i32 : i32, i32
  }
  func.func @transform_1(%arg0: i32) -> (i32, i32) {
    %c0_i32 = arith.constant 0 : i32
    %c0_i32_0 = arith.constant 0 : i32
    %c0_i32_1 = arith.constant 0 : i32
    return %c0_i32, %c0_i32_0 : i32, i32
  }
  func.func @transform_2(%arg0: i32) -> (i32, i32) {
    %c0_i32 = arith.constant 0 : i32
    %c0_i32_0 = arith.constant 0 : i32
    %c0_i32_1 = arith.constant 0 : i32
    return %c0_i32, %c0_i32_0 : i32, i32
  }
  func.func @transform_3(%arg0: i32) -> (i32, i32) {
    %c0_i32 = arith.constant 0 : i32
    %c0_i32_0 = arith.constant 0 : i32
    %c0_i32_1 = arith.constant 0 : i32
    return %c0_i32, %c0_i32_0 : i32, i32
  }
  func.func @transform_4(%arg0: i32) -> (i32, i32) {
    %c0_i32 = arith.constant 0 : i32
    %c0_i32_0 = arith.constant 0 : i32
    %c0_i32_1 = arith.constant 0 : i32
    return %c0_i32, %c0_i32_0 : i32, i32
  }
  func.func @transform_5(%arg0: i32) -> (i32, i32) {
    %c0_i32 = arith.constant 0 : i32
    %c0_i32_0 = arith.constant 0 : i32
    return %arg0, %c0_i32 : i32, i32
  }
}

</mosaic_0001>

<bundles_post_ra>
// kernel: neural_network_forward.1
= control target key start
LH: loop header
LB: loop body
LE: loop exit
PB: predicated region body
PF: predicated region fallthrough
CT: control target
= control target key end

     0   :  { %10 = vsyncpa [#allocation3], 0  ;;  %s404_s0 = inlined_call_operand.vmem [shape: f32[8,16], index: 0, kind: input, shape index: {}]   ;;  %s405_s1 = inlined_call_operand.hbm [shape: f32[16,128], index: 1, kind: input, shape index: {}]   ;;  %s406_s2 = inlined_call_operand.vmem [shape: f32[1,128], index: 2, kind: input, shape index: {}]   ;;  %s407_s3 = inlined_call_operand.hbm [shape: f32[128,128], index: 3, kind: input, shape index: {}]   ;;  %s408_s4 = inlined_call_operand.vmem [shape: f32[1,4], index: 4, kind: input, shape index: {}]   ;;  %s409_s5 = inlined_call_operand.vmem [shape: f32[8,4], index: 5, kind: output, shape index: {}]  }
   0x1   :  { %11 = vsyncpa [#allocation5], 0  ;;  %s350_s18 = smov [#allocation2]  }
   0x2   :  { %s19_s19 = sshll.u32 %s350_s18, 4  ;;  %s20_s19 = int_to_ptr.vmem [resolvable:$true] %s19_s19 }
   0x3   :  { %s314_s20 = scalar_lea.vmem %s20_s19, 256  ;;  %p319_p1 = scmp.lt.s32.totalorder %s20_s19, %s20_s19 }
   0x4   :  { %p315_p0 = scmp.ne.s32.totalorder %s20_s19, %s314_s20  ;;  %p320_p2 = scmp.lt.s32.totalorder %s314_s20, %s314_s20 }
   0x6   :  { %p321_p3 = por %p320_p2, %p319_p1 }
   0x8   :  { %p322_p4 = pnand %p321_p3, %p315_p0 }
   0xa   :  { %325 = shalt.err (!%p322_p4)
}
   0xb   :  { %s351_s21 = smov 128   ;;  %s352_s22 = smov 8  }
   0xc   :  { %25 = dma.hbm_to_vmem [thread:$0]  %s405_s1, 256, %s20_s19, [#allocation3], %s351_s21, %s351_s21, %s352_s22  }
   0xd   :  { %s353_s25 = smov [#allocation4]  }
   0xe   :  { %s33_s26 = sshll.u32 %s353_s25, 4  ;;  %s34_s26 = int_to_ptr.vmem [resolvable:$true] %s33_s26 }
   0xf   :  { %s334_s27 = scalar_lea.vmem %s34_s26, 2048  ;;  %p339_p6 = scmp.lt.s32.totalorder %s34_s26, %s34_s26 }
  0x10   :  { %p335_p5 = scmp.ne.s32.totalorder %s34_s26, %s334_s27  ;;  %p340_p7 = scmp.lt.s32.totalorder %s334_s27, %s334_s27 }
  0x12   :  { %p341_p8 = por %p340_p7, %p339_p6 }
  0x14   :  { %p342_p9 = pnand %p341_p8, %p335_p5 }
  0x16   :  { %345 = shalt.err (!%p342_p9)
}
  0x17   :  { %39 = dma.hbm_to_vmem [thread:$0]  %s407_s3, 2048, %s34_s26, [#allocation5], %s351_s21, %s351_s21, %s352_s22  }
  0x18   :  { %346 = dma.done.wait [#allocation3], 256  }
  0x19   :  { %347 = vsyncadd [#allocation3], 4294967040 }
  0x1a   :  { %348 = dma.done.wait [#allocation5], 2048  }
  0x1b   :  { %349 = vsyncadd [#allocation5], 4294965248  ;;  %v354_v0 = vmov 0.0   ;;  %vm355_vm0 = vmmov 0   ;;  %v50_v1 = vld [vmem:[#allocation2 + $0x8] sm:$0xff]  ;;  %v49_v2 = vld [vmem:[#allocation2] sm:$0xff] }
  0x1c   :  { %258 = vmatprep.subr.mxu0 %v354_v0  ;;  %262 = vmatprep.mubr.msk.f32.mxu0 %vm355_vm0, %v354_v0  ;;  %v48_v3 = vld [vmem:[%s404_s0] sm:$0xff]  ;;  %vm58_vm1 = vcmask 130048   ;;  %v148_v4 = vld [vmem:[#allocation4 + $0x78] sm:$0xff]  ;;  %v146_v6 = vld [vmem:[#allocation4 + $0x68] sm:$0xff]  ;;  %vm227_vm2 = vcmask 31744  }
  0x1d   :  { %265 = vmatprep.subr.mxu1 %v354_v0  ;;  %297 = vmatprep.mubr.msk.f32.mxu1 %vm355_vm0, %v354_v0  ;;  %v147_v5 = vld [vmem:[#allocation4 + $0x70] sm:$0xff]  ;;  %v145_v7 = vld [vmem:[#allocation4 + $0x60] sm:$0xff]  ;;  %v144_v8 = vld [vmem:[#allocation4 + $0x58] sm:$0xff] }
  0x1e   :  { %259 = vmatpush3.msra.mxu0 %v50_v1  ;;  %266 = vmatpush3.msra.mxu1 %v148_v4  ;;  %v143_v9 = vld [vmem:[#allocation4 + $0x50] sm:$0xff]  ;;  %v142_v10 = vld [vmem:[#allocation4 + $0x48] sm:$0xff]  ;;  %v141_v11 = vld [vmem:[#allocation4 + $0x40] sm:$0xff] }
  0x1f   :  { %260 = vmatprep.subr.mxu0 %v354_v0  ;;  %267 = vmatprep.subr.mxu1 %v354_v0  ;;  %v140_v12 = vld [vmem:[#allocation4 + $0x38] sm:$0xff]  ;;  %v139_v13 = vld [vmem:[#allocation4 + $0x30] sm:$0xff]  ;;  %v138_v14 = vld [vmem:[#allocation4 + $0x28] sm:$0xff] }
  0x20   :  { %261 = vmatpush3.msra.mxu0 %v49_v2  ;;  %268 = vmatpush3.msra.mxu1 %v147_v5  ;;  %v137_v15 = vld [vmem:[#allocation4 + $0x20] sm:$0xff]  ;;  %v136_v16 = vld [vmem:[#allocation4 + $0x18] sm:$0xff]  ;;  %v135_v17 = vld [vmem:[#allocation4 + $0x10] sm:$0xff] }
  0x21   :  { %263 = vmatmul.mubr.msk.f32.vlgmr.msra.gmra.mxu0 %vm58_vm1, %v48_v3  ;;  %269 = vmatprep.subr.mxu1 %v354_v0  ;;  %v134_v18 = vld [vmem:[#allocation4 + $0x8] sm:$0xff]  ;;  %v133_v19 = vld [vmem:[#allocation4] sm:$0xff]  ;;  %v235_v20 = vld [vmem:[%s406_s2] ss:$0 sm:$0xff] }
  0x22   :  { %270 = vmatpush3.msra.mxu1 %v146_v6  ;;  %v237_v25 = vld [vmem:[%s408_s4] ss:$0 sm:$0xff] }
  0x23   :  { %271 = vmatprep.subr.mxu1 %v354_v0 }
  0x24   :  { %272 = vmatpush3.msra.mxu1 %v145_v7 }
  0x25   :  { %273 = vmatprep.subr.mxu1 %v354_v0 }
  0x26   :  { %274 = vmatpush3.msra.mxu1 %v144_v8 }
  0x27   :  { %275 = vmatprep.subr.mxu1 %v354_v0 }
  0x28   :  { %276 = vmatpush3.msra.mxu1 %v143_v9 }
  0x29   :  { %277 = vmatprep.subr.mxu1 %v354_v0 }
  0x2a   :  { %278 = vmatpush3.msra.mxu1 %v142_v10 }
  0x2b   :  { %279 = vmatprep.subr.mxu1 %v354_v0 }
  0x2c   :  { %280 = vmatpush3.msra.mxu1 %v141_v11 }
  0x2d   :  { %281 = vmatprep.subr.mxu1 %v354_v0 }
  0x2e   :  { %282 = vmatpush3.msra.mxu1 %v140_v12 }
  0x2f   :  { %283 = vmatprep.subr.mxu1 %v354_v0 }
  0x30   :  { %284 = vmatpush3.msra.mxu1 %v139_v13 }
  0x31   :  { %285 = vmatprep.subr.mxu1 %v354_v0 }
  0x32   :  { %286 = vmatpush3.msra.mxu1 %v138_v14 }
  0x33   :  { %287 = vmatprep.subr.mxu1 %v354_v0 }
  0x34   :  { %288 = vmatpush3.msra.mxu1 %v137_v15 }
  0x35   :  { %289 = vmatprep.subr.mxu1 %v354_v0 }
  0x36   :  { %290 = vmatpush3.msra.mxu1 %v136_v16 }
  0x37   :  { %291 = vmatprep.subr.mxu1 %v354_v0 }
  0x38   :  { %292 = vmatpush3.msra.mxu1 %v135_v17 }
  0x39   :  { %293 = vmatprep.subr.mxu1 %v354_v0 }
  0x3a   :  { %294 = vmatpush3.msra.mxu1 %v134_v18 }
  0x3b   :  { %295 = vmatprep.subr.mxu1 %v354_v0 }
  0x3c   :  { %296 = vmatpush3.msra.mxu1 %v133_v19 }
  0xe1   :  { %v128_v21 = vpop.f32.mrf.mxu0 }
  0xe2   :  { %v129_v22 = vadd.f32 %v235_v20, %v128_v21 }
  0xe3   :  { %v264_v23 = vpop.f32.mrf.mxu0 }
  0xe4   :  { %v132_v24 = vmax.f32 %v129_v22, 0.0 }
  0xe6   :  { %298 = vmatmul.mubr.f32.vlgmr.msra.gmra.mxu1 %v132_v24 }
 0x1a6   :  { %v215_v26 = vpop.f32.mrf.mxu1 }
 0x1a7   :  { %v226_v27 = vadd.f32 %v237_v25, %v215_v26 }
 0x1a8   :  { %v299_v28 = vpop.f32.mrf.mxu1 }
 0x1a9   :  { %228 = vst.msk [vmem:[%s409_s5] sm:$0xff] %vm227_vm2, %v226_v27 }
 0x1aa   :  { %233 = vsyncpa [#allocation3], 1 }
 0x1ab   :  { %234 = vsyncpa [#allocation5], 1 }

</bundles_post_ra>
